<compile_context>
chip_gen: v5e
topology: v5e:2x2
jax: 0.10.0
libtpu: 0.0.40
codegen_flags: <defaults>
</compile_context>

<pallas_src>
import functools
import math

import jax
import jax.numpy as jnp
from jax.experimental import pallas as pl
from jax.experimental.pallas import tpu as pltpu


def _round_up(x, m):
    return ((x + m - 1) // m) * m


def _default_vmem_cap():
    # Generation-aware VMEM budget: 3/4 of physical, capped at 96 MiB
    # (v5e/v6e have 128 MiB, v7x only 64 MiB).  Safe fallback if the query fails.
    try:
        phys = int(pltpu.get_tpu_info().vmem_capacity_bytes)
        return min(96 * 1024 * 1024, (phys * 3) // 4)
    except Exception:
        return 48 * 1024 * 1024


def _row_plan(n_rows, tm, min_row_tiles):
    n_pad = _round_up(max(n_rows, 1), 8)
    tm_eff = min(tm, n_pad)
    if min_row_tiles > 1:
        # Cap the row tile so at least `min_row_tiles` tiles exist on the 'parallel'
        # axis (keeps both v7x TensorCores busy for small-batch / decode shapes).
        cap = max(8, _round_up(-(-n_pad // min_row_tiles), 8))
        tm_eff = min(tm_eff, cap)
    n_pad = _round_up(n_pad, tm_eff)
    return n_pad, tm_eff


# ----------------------------------------------------------------------------- pass-1 kernels


def _fwd_fulld_kernel(x_ref, wt_ref, b_ref, logits_ref, lse_ref, m_ref, s_ref):
    # Full-D contraction: x tile is VMEM-resident across the vocab sweep (block index (i, 0)).
    # x_ref:      (TM, D)    activation row tile (MXU dtype)
    # wt_ref:     (D, TV)    streamed weight tile (pre-transposed, pre-cast, pre-padded)
    # b_ref:      (1, TV)    f32 bias tile (padded lanes hold -1e30)
    # logits_ref: (TM, TV)   logits output tile (f32 or bf16 intermediate)
    # lse_ref:    (TM, 1)    per-row logsumexp, written at the last vocab tile
    # m_ref/s_ref: f32 VMEM scratch — running max / running sum-exp (online softmax)
    j = pl.program_id(1)
    nj = pl.num_programs(1)

    @pl.when(j == 0)
    def _():
        m_ref[...] = jnp.full_like(m_ref, -jnp.inf)
        s_ref[...] = jnp.zeros_like(s_ref)

    logits = jnp.dot(x_ref[...], wt_ref[...],
                     preferred_element_type=jnp.float32) + b_ref[...]
    logits_ref[...] = logits.astype(logits_ref.dtype)

    m_prev = m_ref[...]
    m_new = jnp.maximum(m_prev, jnp.max(logits, axis=-1, keepdims=True))
    s_ref[...] = (s_ref[...] * jnp.exp(m_prev - m_new)
                  + jnp.sum(jnp.exp(logits - m_new), axis=-1, keepdims=True))
    m_ref[...] = m_new

    @pl.when(j == nj - 1)
    def _():
        lse_ref[...] = m_ref[...] + jnp.log(s_ref[...])


def _fwd_ktiled_kernel(x_ref, wt_ref, b_ref, logits_ref, lse_ref,
                       acc_ref, m_ref, s_ref):
    # Fallback for D > tk_max: K-tiled contraction with an f32 accumulator.
    j = pl.program_id(1)
    k = pl.program_id(2)
    nj = pl.num_programs(1)
    nk = pl.num_programs(2)

    @pl.when(jnp.logical_and(j == 0, k == 0))
    def _():
        m_ref[...] = jnp.full_like(m_ref, -jnp.inf)
        s_ref[...] = jnp.zeros_like(s_ref)

    part = jnp.dot(x_ref[...], wt_ref[...], preferred_element_type=jnp.float32)

    # Initialise the accumulator with bias + first partial dot (no zero-fill pass).
    @pl.when(k == 0)
    def _():
        acc_ref[...] = part + b_ref[...]

    @pl.when(k > 0)
    def _():
        acc_ref[...] += part

    @pl.when(k == nk - 1)
    def _():
        logits = acc_ref[...]
        logits_ref[...] = logits.astype(logits_ref.dtype)
        m_prev = m_ref[...]
        m_new = jnp.maximum(m_prev, jnp.max(logits, axis=-1, keepdims=True))
        s_ref[...] = (s_ref[...] * jnp.exp(m_prev - m_new)
                      + jnp.sum(jnp.exp(logits - m_new), axis=-1, keepdims=True))
        m_ref[...] = m_new

    @pl.when(jnp.logical_and(j == nj - 1, k == nk - 1))
    def _():
        lse_ref[...] = m_ref[...] + jnp.log(s_ref[...])


# ----------------------------------------------------------------------------- pass-2 kernel


def _normalize_kernel(logits_ref, lse_ref, o_ref):
    # out = logits - logsumexp(row)   (pure elementwise, lane-dense stores)
    o_ref[...] = (logits_ref[...].astype(jnp.float32) - lse_ref[...]).astype(o_ref.dtype)


# ----------------------------------------------------------------------------- forward


@functools.partial(
    jax.jit,
    static_argnames=("vocab", "d_pad", "v_pad", "tv_eff", "tk_eff", "tm",
                     "out_dtype", "min_row_tiles", "vmem_cap"))
def _projection_forward(x, weight_t, bias2, *, vocab, d_pad, v_pad, tv_eff, tk_eff,
                        tm, out_dtype, min_row_tiles, vmem_cap):
    *lead, d_model = x.shape
    n_rows = math.prod(lead) if lead else 1

    # Cast the activations (N x D, small vs the weight) to the MXU dtype; accumulation
    # and all softmax math stay f32.
    x2 = x.reshape(n_rows, d_model).astype(weight_t.dtype)

    n_pad, tm_eff = _row_plan(n_rows, tm, min_row_tiles)
    if n_pad != n_rows or d_pad != d_model:
        x2 = jnp.pad(x2, ((0, n_pad - n_rows), (0, d_pad - d_model)))

    out_dtype = jnp.dtype(out_dtype)
    # bf16 intermediate when the output is 16-bit (halves pass-2 HBM traffic); f32 otherwise.
    inter_dtype = jnp.dtype(jnp.bfloat16) if out_dtype.itemsize <= 2 else jnp.dtype(jnp.float32)

    ni = n_pad // tm_eff
    nj = v_pad // tv_eff

    out_shapes = (jax.ShapeDtypeStruct((n_pad, v_pad), inter_dtype),
                  jax.ShapeDtypeStruct((n_pad, 1), jnp.float32))

    if tk_eff == d_pad:
        # Common case: full-D contraction, x tile resident across the whole vocab sweep.
        logits, lse = pl.pallas_call(
            _fwd_fulld_kernel,
            out_shape=out_shapes,
            grid=(ni, nj),
            in_specs=[
                pl.BlockSpec((tm_eff, d_pad), lambda i, j: (i, 0)),
                pl.BlockSpec((d_pad, tv_eff), lambda i, j: (0, j)),
                pl.BlockSpec((1, tv_eff), lambda i, j: (0, j)),
            ],
            out_specs=(
                pl.BlockSpec((tm_eff, tv_eff), lambda i, j: (i, j)),
                pl.BlockSpec((tm_eff, 1), lambda i, j: (i, 0)),
            ),
            scratch_shapes=[
                pltpu.VMEM((tm_eff, 1), jnp.float32),   # running max
                pltpu.VMEM((tm_eff, 1), jnp.float32),   # running sum-exp
            ],
            compiler_params=pltpu.CompilerParams(
                dimension_semantics=("parallel", "arbitrary"),
                vmem_limit_bytes=vmem_cap),
        )(x2, weight_t, bias2)
    else:
        nk = d_pad // tk_eff
        logits, lse = pl.pallas_call(
            _fwd_ktiled_kernel,
            out_shape=out_shapes,
            grid=(ni, nj, nk),
            in_specs=[
                pl.BlockSpec((tm_eff, tk_eff), lambda i, j, k: (i, k)),
                pl.BlockSpec((tk_eff, tv_eff), lambda i, j, k: (k, j)),
                pl.BlockSpec((1, tv_eff), lambda i, j, k: (0, j)),
            ],
            out_specs=(
                pl.BlockSpec((tm_eff, tv_eff), lambda i, j, k: (i, j)),
                pl.BlockSpec((tm_eff, 1), lambda i, j, k: (i, 0)),
            ),
            scratch_shapes=[
                pltpu.VMEM((tm_eff, tv_eff), jnp.float32),   # f32 matmul accumulator
                pltpu.VMEM((tm_eff, 1), jnp.float32),
                pltpu.VMEM((tm_eff, 1), jnp.float32),
            ],
            compiler_params=pltpu.CompilerParams(
                dimension_semantics=("parallel", "arbitrary", "arbitrary"),
                vmem_limit_bytes=vmem_cap),
        )(x2, weight_t, bias2)

    # ---- pass 2: normalize (logits - lse), large lane-dense elementwise blocks ----------
    elem_bytes = inter_dtype.itemsize + out_dtype.itemsize
    budget = (vmem_cap * 3) // 4
    nvt = v_pad // tv_eff
    best = 1
    for f in range(1, nvt + 1):
        # 2x for double-buffered input + output tiles.
        if nvt % f == 0 and tm_eff * tv_eff * f * elem_bytes * 2 <= budget:
            best = f
    tv2 = tv_eff * best

    # When the intermediate already has the output dtype, write the result in place
    # (no second N x V allocation / extra HBM footprint).
    io_alias = {0: 0} if inter_dtype == out_dtype else {}

    out = pl.pallas_call(
        _normalize_kernel,
        out_shape=jax.ShapeDtypeStruct((n_pad, v_pad), out_dtype),
        grid=(n_pad // tm_eff, v_pad // tv2),
        in_specs=[
            pl.BlockSpec((tm_eff, tv2), lambda i, j: (i, j)),
            pl.BlockSpec((tm_eff, 1), lambda i, j: (i, 0)),
        ],
        out_specs=pl.BlockSpec((tm_eff, tv2), lambda i, j: (i, j)),
        input_output_aliases=io_alias,
        compiler_params=pltpu.CompilerParams(
            dimension_semantics=("parallel", "parallel"),
            vmem_limit_bytes=vmem_cap),
    )(logits, lse)

    return out[:n_rows, :vocab].reshape(*lead, vocab)


class ProjectionLayerPallas:
    """log_softmax(x @ W.T + b, axis=-1) with the weight persisted once in MXU layout."""

    def __init__(self, weight, bias, *, mxu_dtype=jnp.bfloat16, out_dtype=None,
                 tm=512, tv=512, tk_max=4096, min_row_tiles=1, vmem_cap=None):
        weight = jnp.asarray(weight)   # (V, D) — nn.Linear layout
        bias = jnp.asarray(bias)       # (V,)
        vocab, d_model = weight.shape
        assert bias.shape == (vocab,)
        assert tm % 8 == 0 and tv % 128 == 0 and tk_max % 128 == 0

        self.d_model, self.vocab = d_model, vocab
        self.tm, self.min_row_tiles = tm, min_row_tiles
        self.out_dtype = jnp.dtype(out_dtype) if out_dtype is not None else None
        self.vmem_cap = int(vmem_cap) if vmem_cap is not None else _default_vmem_cap()

        # ---- vocab tiling plan (128-lane rule) ----
        v_pad = _round_up(vocab, 128)
        if v_pad > tv:
            v_pad = _round_up(v_pad, tv)
            tv_eff = tv
        else:
            tv_eff = v_pad
        # Online-softmax safety: no vocab tile may be 100% padding (would corrupt lse).
        assert v_pad - vocab < tv_eff

        # ---- contraction plan: full-D block when it fits, K-tiled fallback otherwise ----
        if d_model > tk_max:
            tk_eff = tk_max
            d_pad = _round_up(d_model, tk_eff)
        else:
            tk_eff = d_model
            d_pad = d_model

        self.v_pad, self.tv_eff, self.d_pad, self.tk_eff = v_pad, tv_eff, d_pad, tk_eff

        # ---- persist the weight ONCE: transposed, MXU dtype, pre-padded ----
        mxu_dtype = jnp.dtype(mxu_dtype) if mxu_dtype is not None else jnp.dtype(weight.dtype)
        wt = weight.T.astype(mxu_dtype)                     # (D, V)
        if d_pad != d_model or v_pad != vocab:
            wt = jnp.pad(wt, ((0, d_pad - d_model), (0, v_pad - vocab)))
        self.weight_t = wt

        b = bias.astype(jnp.float32)
        if v_pad != vocab:
            # Padded vocab lanes get a huge negative bias so exp(.) == 0 in the softmax
            # reductions; they are sliced off at the end.
            b = jnp.pad(b, (0, v_pad - vocab), constant_values=-1e30)
        self.bias2 = b.reshape(1, v_pad)

    def __call__(self, x):
        out_dtype = self.out_dtype if self.out_dtype is not None else jnp.dtype(x.dtype)
        return _projection_forward(
            x, self.weight_t, self.bias2,
            vocab=self.vocab, d_pad=self.d_pad, v_pad=self.v_pad,
            tv_eff=self.tv_eff, tk_eff=self.tk_eff, tm=self.tm,
            out_dtype=out_dtype, min_row_tiles=self.min_row_tiles,
            vmem_cap=self.vmem_cap)


if __name__ == "__main__":
    # Small shapes consistent with the module: (batch, seq, d_model) -> (batch, seq, vocab)
    B, S, D, V = 2, 8, 32, 128
    key = jax.random.PRNGKey(0)
    kx, kw, kb = jax.random.split(key, 3)

    x = jax.random.normal(kx, (B, S, D), dtype=jnp.float32)
    bound = 1.0 / math.sqrt(D)
    weight = jax.random.uniform(kw, (V, D), minval=-bound, maxval=bound, dtype=jnp.float32)
    bias = jax.random.uniform(kb, (V,), minval=-bound, maxval=bound, dtype=jnp.float32)

    ref = jax.nn.log_softmax(x @ weight.T + bias, axis=-1)

    # Default path: persisted padded bf16 weight / bf16 MXU operands, f32 accumulation & softmax.
    layer = ProjectionLayerPallas(weight, bias)
    out = layer(x)
    jax.block_until_ready(out)
    assert out.shape == (B, S, V)
    assert jnp.allclose(out, ref, atol=2e-2), float(jnp.max(jnp.abs(out - ref)))

    # Full f32 path — tight tolerance proves the online-softmax algorithm is exact.
    out_f32 = ProjectionLayerPallas(weight, bias, mxu_dtype=jnp.float32)(x)
    jax.block_until_ready(out_f32)
    assert jnp.allclose(out_f32, ref, atol=1e-5, rtol=1e-5)

    # Non-divisible shapes: exercises row / vocab padding and the masked-lane bias.
    B2, S2, D2, V2 = 2, 5, 40, 200
    kx2, kw2, kb2 = jax.random.split(jax.random.PRNGKey(1), 3)
    x_b = jax.random.normal(kx2, (B2, S2, D2), dtype=jnp.float32)
    w_b = jax.random.normal(kw2, (V2, D2), dtype=jnp.float32) / math.sqrt(D2)
    b_b = jax.random.normal(kb2, (V2,), dtype=jnp.float32) * 0.1
    ref_b = jax.nn.log_softmax(x_b @ w_b.T + b_b, axis=-1)
    out_b = ProjectionLayerPallas(w_b, b_b, mxu_dtype=jnp.float32)(x_b)
    jax.block_until_ready(out_b)
    assert jnp.allclose(out_b, ref_b, atol=1e-4, rtol=1e-4)

    # K-tiled contraction fallback (D > tk_max).
    B3, S3, D3, V3 = 2, 8, 256, 384
    kx3, kw3, kb3 = jax.random.split(jax.random.PRNGKey(2), 3)
    x_c = jax.random.normal(kx3, (B3, S3, D3), dtype=jnp.float32)
    w_c = jax.random.normal(kw3, (V3, D3), dtype=jnp.float32) / math.sqrt(D3)
    b_c = jax.random.normal(kb3, (V3,), dtype=jnp.float32) * 0.1
    ref_c = jax.nn.log_softmax(x_c @ w_c.T + b_c, axis=-1)
    out_c = ProjectionLayerPallas(w_c, b_c, mxu_dtype=jnp.float32, tk_max=128)(x_c)
    jax.block_until_ready(out_c)
    assert jnp.allclose(out_c, ref_c, atol=1e-4, rtol=1e-4)

    # bf16 output: bf16 logits intermediate (half the pass-2 HBM traffic).
    out_bf = ProjectionLayerPallas(weight, bias, out_dtype=jnp.bfloat16)(x)
    jax.block_until_ready(out_bf)
    assert jnp.allclose(out_bf.astype(jnp.float32), ref, atol=5e-2)

    print("KERNEL_OK")
</pallas_src>

<mosaic_0001>
module attributes {stable_mosaic.version = 11 : i64} {
  func.func @_normalize_kernel(%arg0: i32, %arg1: i32, %arg2: memref<16x128xf32, #tpu.memory_space<vmem>>, %arg3: memref<16x1xf32, #tpu.memory_space<vmem>>, %arg4: memref<16x128xf32, #tpu.memory_space<vmem>>) attributes {dimension_semantics = [#tpu.dimension_semantics<parallel>, #tpu.dimension_semantics<parallel>], iteration_bounds = array<i64: 1, 1>, scalar_prefetch = 0 : i64, scratch_operands = 0 : i64, tpu.core_type = #tpu.core_type<tc>, window_params = [{transform_indices = @transform_0, window_bounds = array<i64: 16, 128>}, {transform_indices = @transform_1, window_bounds = array<i64: 16, 1>}, {transform_indices = @transform_2, window_bounds = array<i64: 16, 128>}]} {
    %c0 = arith.constant 0 : index
    %c0_0 = arith.constant 0 : index
    %0 = vector.load %arg2[%c0, %c0_0] : memref<16x128xf32, #tpu.memory_space<vmem>>, vector<16x128xf32>
    %c0_1 = arith.constant 0 : index
    %c0_2 = arith.constant 0 : index
    %1 = vector.load %arg3[%c0_1, %c0_2] : memref<16x1xf32, #tpu.memory_space<vmem>>, vector<16x1xf32>
    %2 = vector.broadcast %1 : vector<16x1xf32> to vector<16x128xf32>
    %3 = arith.subf %0, %2 : vector<16x128xf32>
    %c0_3 = arith.constant 0 : index
    %c0_4 = arith.constant 0 : index
    %4 = vector.load %arg4[%c0_3, %c0_4] : memref<16x128xf32, #tpu.memory_space<vmem>>, vector<16x128xf32>
    tpu.vector_store %arg4[%c0_3, %c0_4], %3 {strides = array<i32>} : memref<16x128xf32, #tpu.memory_space<vmem>>, vector<16x128xf32>,
    return
  }
  func.func @transform_0(%arg0: i32, %arg1: i32) -> (i32, i32) {
    %c0_i32 = arith.constant 0 : i32
    return %arg0, %arg1 : i32, i32
  }
  func.func @transform_1(%arg0: i32, %arg1: i32) -> (i32, i32) {
    %c0_i32 = arith.constant 0 : i32
    %c0_i32_0 = arith.constant 0 : i32
    return %arg0, %c0_i32 : i32, i32
  }
  func.func @transform_2(%arg0: i32, %arg1: i32) -> (i32, i32) {
    %c0_i32 = arith.constant 0 : i32
    return %arg0, %arg1 : i32, i32
  }
}

module attributes {stable_mosaic.version = 11 : i64} {
  func.func @_fwd_fulld_kernel(%arg0: i32, %arg1: i32, %arg2: memref<16x32xbf16, #tpu.memory_space<vmem>>, %arg3: memref<32x128xbf16, #tpu.memory_space<vmem>>, %arg4: memref<1x128xf32, #tpu.memory_space<vmem>>, %arg5: memref<16x128xf32, #tpu.memory_space<vmem>>, %arg6: memref<16x1xf32, #tpu.memory_space<vmem>>, %arg7: memref<16x1xf32, #tpu.memory_space<vmem>>, %arg8: memref<16x1xf32, #tpu.memory_space<vmem>>) attributes {dimension_semantics = [#tpu.dimension_semantics<parallel>, #tpu.dimension_semantics<arbitrary>], iteration_bounds = array<i64: 1, 1>, scalar_prefetch = 0 : i64, scratch_operands = 2 : i64, tpu.core_type = #tpu.core_type<tc>, window_params = [{transform_indices = @transform_0, window_bounds = array<i64: 16, 32>}, {transform_indices = @transform_1, window_bounds = array<i64: 32, 128>}, {transform_indices = @transform_2, window_bounds = array<i64: 1, 128>}, {transform_indices = @transform_3, window_bounds = array<i64: 16, 128>}, {transform_indices = @transform_4, window_bounds = array<i64: 16, 1>}]} {
    %c0_i32 = arith.constant 0 : i32
    %0 = arith.cmpi eq, %arg1, %c0_i32 : i32
    %1 = arith.extui %0 : i1 to i32
    %c0_i32_0 = arith.constant 0 : i32
    %2 = arith.cmpi ne, %1, %c0_i32_0 : i32
    scf.if %2 {
      %cst_20 = arith.constant 0xFF800000 : f32
      %29 = vector.broadcast %cst_20 : f32 to vector<16x1xf32>
      %c0_21 = arith.constant 0 : index
      %c0_22 = arith.constant 0 : index
      %30 = vector.load %arg7[%c0_21, %c0_22] : memref<16x1xf32, #tpu.memory_space<vmem>>, vector<16x1xf32>
      tpu.vector_store %arg7[%c0_21, %c0_22], %29 {strides = array<i32>} : memref<16x1xf32, #tpu.memory_space<vmem>>, vector<16x1xf32>,
      %cst_23 = arith.constant 0.000000e+00 : f32
      %31 = vector.broadcast %cst_23 : f32 to vector<16x1xf32>
      %c0_24 = arith.constant 0 : index
      %c0_25 = arith.constant 0 : index
      %32 = vector.load %arg8[%c0_24, %c0_25] : memref<16x1xf32, #tpu.memory_space<vmem>>, vector<16x1xf32>
      tpu.vector_store %arg8[%c0_24, %c0_25], %31 {strides = array<i32>} : memref<16x1xf32, #tpu.memory_space<vmem>>, vector<16x1xf32>,
    } else {
    }
    %c0 = arith.constant 0 : index
    %c0_1 = arith.constant 0 : index
    %3 = vector.load %arg2[%c0, %c0_1] : memref<16x32xbf16, #tpu.memory_space<vmem>>, vector<16x32xbf16>
    %c0_2 = arith.constant 0 : index
    %c0_3 = arith.constant 0 : index
    %4 = vector.load %arg3[%c0_2, %c0_3] : memref<32x128xbf16, #tpu.memory_space<vmem>>, vector<32x128xbf16>
    %cst = arith.constant dense<0.000000e+00> : vector<16x128xf32>
    %5 = tpu.matmul %3, %4, %cst {dimension_numbers = #tpu.dot_dimension_numbers<[1], [0], [0], [1], [0, 0, 1, 1], [], []>} : vector<16x32xbf16>, vector<32x128xbf16>, vector<16x128xf32> -> vector<16x128xf32>
    %c0_4 = arith.constant 0 : index
    %c0_5 = arith.constant 0 : index
    %6 = vector.load %arg4[%c0_4, %c0_5] : memref<1x128xf32, #tpu.memory_space<vmem>>, vector<1x128xf32>
    %7 = vector.broadcast %6 : vector<1x128xf32> to vector<16x128xf32>
    %8 = arith.addf %5, %7 : vector<16x128xf32>
    %c0_6 = arith.constant 0 : index
    %c0_7 = arith.constant 0 : index
    %9 = vector.load %arg5[%c0_6, %c0_7] : memref<16x128xf32, #tpu.memory_space<vmem>>, vector<16x128xf32>
    tpu.vector_store %arg5[%c0_6, %c0_7], %8 {strides = array<i32>} : memref<16x128xf32, #tpu.memory_space<vmem>>, vector<16x128xf32>,
    %c0_8 = arith.constant 0 : index
    %c0_9 = arith.constant 0 : index
    %10 = vector.load %arg7[%c0_8, %c0_9] : memref<16x1xf32, #tpu.memory_space<vmem>>, vector<16x1xf32>
    %cst_10 = arith.constant dense<0xFF800000> : vector<16xf32>
    %11 = vector.multi_reduction <maximumf>, %8, %cst_10 [1] : vector<16x128xf32> to vector<16xf32>
    %12 = vector.shape_cast %11 : vector<16xf32> to vector<16x1xf32>
    %13 = arith.maximumf %10, %12 : vector<16x1xf32>
    %c0_11 = arith.constant 0 : index
    %c0_12 = arith.constant 0 : index
    %14 = vector.load %arg8[%c0_11, %c0_12] : memref<16x1xf32, #tpu.memory_space<vmem>>, vector<16x1xf32>
    %15 = arith.subf %10, %13 : vector<16x1xf32>
    %16 = math.exp %15 : vector<16x1xf32>
    %17 = arith.mulf %14, %16 : vector<16x1xf32>
    %18 = vector.broadcast %13 : vector<16x1xf32> to vector<16x128xf32>
    %19 = arith.subf %8, %18 : vector<16x128xf32>
    %20 = math.exp %19 : vector<16x128xf32>
    %cst_13 = arith.constant dense<0.000000e+00> : vector<16xf32>
    %21 = vector.multi_reduction <add>, %20, %cst_13 [1] : vector<16x128xf32> to vector<16xf32>
    %22 = vector.shape_cast %21 : vector<16xf32> to vector<16x1xf32>
    %23 = arith.addf %17, %22 : vector<16x1xf32>
    %c0_14 = arith.constant 0 : index
    %c0_15 = arith.constant 0 : index
    %24 = vector.load %arg8[%c0_14, %c0_15] : memref<16x1xf32, #tpu.memory_space<vmem>>, vector<16x1xf32>
    tpu.vector_store %arg8[%c0_14, %c0_15], %23 {strides = array<i32>} : memref<16x1xf32, #tpu.memory_space<vmem>>, vector<16x1xf32>,
    %c0_16 = arith.constant 0 : index
    %c0_17 = arith.constant 0 : index
    %25 = vector.load %arg7[%c0_16, %c0_17] : memref<16x1xf32, #tpu.memory_space<vmem>>, vector<16x1xf32>
    tpu.vector_store %arg7[%c0_16, %c0_17], %13 {strides = array<i32>} : memref<16x1xf32, #tpu.memory_space<vmem>>, vector<16x1xf32>,
    %c0_i32_18 = arith.constant 0 : i32
    %26 = arith.cmpi eq, %arg1, %c0_i32_18 : i32
    %27 = arith.extui %26 : i1 to i32
    %c0_i32_19 = arith.constant 0 : i32
    %28 = arith.cmpi ne, %27, %c0_i32_19 : i32
    scf.if %28 {
      %c0_20 = arith.constant 0 : index
      %c0_21 = arith.constant 0 : index
      %29 = vector.load %arg7[%c0_20, %c0_21] : memref<16x1xf32, #tpu.memory_space<vmem>>, vector<16x1xf32>
      %c0_22 = arith.constant 0 : index
      %c0_23 = arith.constant 0 : index
      %30 = vector.load %arg8[%c0_22, %c0_23] : memref<16x1xf32, #tpu.memory_space<vmem>>, vector<16x1xf32>
      %31 = math.log %30 : vector<16x1xf32>
      %32 = arith.addf %29, %31 : vector<16x1xf32>
      %c0_24 = arith.constant 0 : index
      %c0_25 = arith.constant 0 : index
      %33 = vector.load %arg6[%c0_24, %c0_25] : memref<16x1xf32, #tpu.memory_space<vmem>>, vector<16x1xf32>
      tpu.vector_store %arg6[%c0_24, %c0_25], %32 {strides = array<i32>} : memref<16x1xf32, #tpu.memory_space<vmem>>, vector<16x1xf32>,
    } else {
    }
    return
  }
  func.func @transform_0(%arg0: i32, %arg1: i32) -> (i32, i32) {
    %c0_i32 = arith.constant 0 : i32
    %c0_i32_0 = arith.constant 0 : i32
    return %arg0, %c0_i32 : i32, i32
  }
  func.func @transform_1(%arg0: i32, %arg1: i32) -> (i32, i32) {
    %c0_i32 = arith.constant 0 : i32
    %c0_i32_0 = arith.constant 0 : i32
    return %c0_i32, %arg1 : i32, i32
  }
  func.func @transform_2(%arg0: i32, %arg1: i32) -> (i32, i32) {
    %c0_i32 = arith.constant 0 : i32
    %c0_i32_0 = arith.constant 0 : i32
    return %c0_i32, %arg1 : i32, i32
  }
  func.func @transform_3(%arg0: i32, %arg1: i32) -> (i32, i32) {
    %c0_i32 = arith.constant 0 : i32
    return %arg0, %arg1 : i32, i32
  }
  func.func @transform_4(%arg0: i32, %arg1: i32) -> (i32, i32) {
    %c0_i32 = arith.constant 0 : i32
    %c0_i32_0 = arith.constant 0 : i32
    return %arg0, %c0_i32 : i32, i32
  }
}

</mosaic_0001>

<bundles_post_ra>
// kernel: _projection_forward.3
= control target key start
LH: loop header
LB: loop body
LE: loop exit
PB: predicated region body
PF: predicated region fallthrough
CT: control target
= control target key end

     0   :  { %v35_v0 = vmov 0   ;;  %s69_s1 = inlined_call_operand.vmem [shape: f32[16,1], index: 1, kind: input, shape index: {}]   ;;  %s70_s0 = inlined_call_operand.vmem [shape: f32[16,128], index: 0, kind: input, shape index: {}, may-alias: {0,2}]   ;;  %s71_s2 = inlined_call_operand.vmem [shape: f32[16,128], index: 2, kind: output, shape index: {}, may-alias: {0,2}]  }
   0x1   :  { %34 = vset.pattern.permute.xlu0 %v35_v0  ;;  %v13_v1 = vld [vmem:[%s69_s1] sm:$0xff]  ;;  %v14_v2 = vld [vmem:[%s69_s1 + $0x8] sm:$0xff] }
   0x2   :  { %17 = vperm.xlu0 %34, %v13_v1   ;;  %v11_v3 = vld [vmem:[%s70_s0] sm:$0xff] }
   0xa   :  { %22 = vperm.xlu0 %34, %v14_v2  }
  0x74   :  { %v18_v4 = vpop.permute.xlu0 %17 }
  0x75   :  { %v25_v5 = vsub.f32 %v11_v3, %v18_v4 }
  0x77   :  { %27 = vst [vmem:[%s71_s2] sm:$0xff] %v25_v5 }
  0x7c   :  { %v23_v7 = vpop.permute.xlu0 %22 }
  0x7e   :  { %v12_v6 = vld [vmem:[%s70_s0 + $0x8] sm:$0xff] }
  0x7f   :  { %v26_v8 = vsub.f32 %v12_v6, %v23_v7 }
  0x81   :  { %28 = vst [vmem:[%s71_s2 + $0x8] sm:$0xff] %v26_v8 }

// kernel: _projection_forward.2
= control target key start
LH: loop header
LB: loop body
LE: loop exit
PB: predicated region body
PF: predicated region fallthrough
CT: control target
= control target key end

     0   :  { %vm53_vm0 = vcmask 261120   ;;  %vm21_vm1 = vcmask 7168   ;;  %v175_v3 = vmov -inf   ;;  %v176_v9 = vmov 0   ;;  %s237_s1 = inlined_call_operand.vmem [shape: bf16[32,128], index: 1, kind: input, shape index: {}]   ;;  %s238_s2 = inlined_call_operand.vmem [shape: f32[1,128], index: 2, kind: input, shape index: {}]   ;;  %s239_s0 = inlined_call_operand.vmem [shape: bf16[16,32], index: 0, kind: input, shape index: {}]   ;;  %s240_s3 = inlined_call_operand.vmem [shape: f32[16,128], index: 3, kind: output, shape index: {0}]   ;;  %s241_s4 = inlined_call_operand.vmem [shape: f32[16,1], index: 4, kind: output, shape index: {1}]  }
   0x1   :  { %v156_v0 = vld [vmem:[%s237_s1 + $0x8] sm:$0xff]  ;;  %v155_v1 = vld [vmem:[%s237_s1] sm:$0xff]  ;;  %22 = vst.msk [vmem:[#allocation2] sm:$0xff] %vm21_vm1, %v175_v3  ;;  %160 = vset.pattern.permute.xlu1 %v176_v9  ;;  %161 = vset.pattern.permute.xlu0 %v176_v9  ;;  %v177_v10 = vmov 0.0  }
   0x2   :  { %63 = vmatpush.bf16.msra.mxu0 %v156_v0  ;;  %v154_v2 = vld [vmem:[%s239_s0] sm:$0xff]  ;;  %23 = vst.msk [vmem:[#allocation2 + $0x8] sm:$0xff] %vm21_vm1, %v175_v3 }
   0x3   :  { %v162_v4 = vld [vmem:[%s238_s2] ss:$0 sm:$0xff]  ;;  %24 = vst.msk [vmem:[#allocation3] sm:$0xff] %vm21_vm1, %v177_v10 }
   0x4   :  { %25 = vst.msk [vmem:[#allocation3 + $0x8] sm:$0xff] %vm21_vm1, %v177_v10 }
   0x6   :  { %64 = vmatpush.bf16.msra.mxu0 %v155_v1 }
   0x8   :  { %v73_v11 = vld [vmem:[#allocation2] sm:$0xff] }
   0x9   :  { %153 = vmatmul.msk.bf16.vlgmr.msra.gmra.mxu0 %vm53_vm0, %v154_v2  ;;  %v74_v15 = vld [vmem:[#allocation2 + $0x8] sm:$0xff] }
   0xa   :  { %v81_v30 = vld [vmem:[#allocation3] sm:$0xff] }
   0xb   :  { %v82_v35 = vld [vmem:[#allocation3 + $0x8] sm:$0xff] }
  0x86   :  { %v66_v5 = vpop.f32.mrf.mxu0 }
  0x87   :  { %v67_v6 = vadd.f32 %v162_v4, %v66_v5 }
  0x89   :  { %71 = vst [vmem:[%s240_s3] sm:$0xff] %v67_v6  ;;  %75 = vmax.xlane.f32.xlu0 %v67_v6 }
  0x8e   :  { %v68_v7 = vpop.f32.mrf.mxu0 }
  0x8f   :  { %v69_v8 = vadd.f32 %v162_v4, %v68_v7 }
  0x91   :  { %72 = vst [vmem:[%s240_s3 + $0x8] sm:$0xff] %v69_v8  ;;  %77 = vmax.xlane.f32.xlu0 %v69_v8 }
  0xfc   :  { %v76_v12 = vpop.xlane.xlu0 %75 }
  0xfd   :  { %v79_v13 = vmax.f32 %v73_v11, %v76_v12 }
  0xff   :  { %v83_v14 = vsub.f32 %v73_v11, %v79_v13  ;;  %116 = vst.msk [vmem:[#allocation2] sm:$0xff] %vm21_vm1, %v79_v13  ;;  %93 = vperm.xlu1 %160, %v79_v13  }
 0x101   :  { %v85_v27 = vmul.f32 1.442695, %v83_v14 }
 0x104   :  { %v78_v16 = vpop.xlane.xlu0 %77 }
 0x105   :  { %v80_v17 = vmax.f32 %v74_v15, %v78_v16 }
 0x106   :  { %v121_v43 = vld [vmem:[#allocation2] sm:$0xff] }
 0x107   :  { %v84_v18 = vsub.f32 %v74_v15, %v80_v17  ;;  %117 = vst.msk [vmem:[#allocation2 + $0x8] sm:$0xff] %vm21_vm1, %v80_v17  ;;  %98 = vperm.xlu1 %160, %v80_v17  }
 0x109   :  { %v87_v28 = vmul.f32 1.442695, %v84_v18 }
 0x10e   :  { %v122_v47 = vld [vmem:[#allocation2 + $0x8] sm:$0xff] }
 0x171   :  { %v94_v19 = vpop.permute.xlu1 %93 }
 0x172   :  { %v101_v20 = vsub.f32 %v67_v6, %v94_v19 }
 0x174   :  { %v103_v21 = vmul.f32 1.442695, %v101_v20 }
 0x176   :  { %163 = vpow2.f32 %v103_v21 }
 0x179   :  { %v99_v22 = vpop.permute.xlu1 %98 }
 0x17a   :  { %v102_v23 = vsub.f32 %v69_v8, %v99_v22 }
 0x17c   :  { %v164_v24 = vpop.eup %163  ;;  %v105_v25 = vmul.f32 1.442695, %v102_v23 }
 0x17d   :  { %107 = vadd.xlane.f32.xlu2 %v164_v24 }
 0x17e   :  { %165 = vpow2.f32 %v105_v25 }
 0x17f   :  { %167 = vpow2.f32 %v85_v27 }
 0x180   :  { %169 = vpow2.f32 %v87_v28 }
 0x184   :  { %v166_v26 = vpop.eup %165 }
 0x185   :  { %109 = vadd.xlane.f32.xlu2 %v166_v26  ;;  %v168_v29 = vpop.eup %167 }
 0x186   :  { %v89_v31 = vmul.f32 %v168_v29, %v81_v30  ;;  %v170_v34 = vpop.eup %169 }
 0x187   :  { %v90_v36 = vmul.f32 %v170_v34, %v82_v35 }
 0x1f0   :  { %v108_v32 = vpop.xlane.xlu2 %107 }
 0x1f1   :  { %v111_v33 = vadd.f32 %v108_v32, %v89_v31 }
 0x1f3   :  { %114 = vst.msk [vmem:[#allocation3] sm:$0xff] %vm21_vm1, %v111_v33 }
 0x1f8   :  { %v110_v37 = vpop.xlane.xlu2 %109 }
 0x1f9   :  { %v112_v38 = vadd.f32 %v110_v37, %v90_v36 }
 0x1fa   :  { %v123_v39 = vld [vmem:[#allocation3] sm:$0xff] }
 0x1fb   :  { %171 = vlog2.f32 %v123_v39  ;;  %115 = vst.msk [vmem:[#allocation3 + $0x8] sm:$0xff] %vm21_vm1, %v112_v38 }
 0x201   :  { %v172_v40 = vpop.eup %171 }
 0x202   :  { %v126_v41 = vmul.f32 0.6931472, %v172_v40  ;;  %v124_v42 = vld [vmem:[#allocation3 + $0x8] sm:$0xff] }
 0x203   :  { %173 = vlog2.f32 %v124_v42 }
 0x204   :  { %v129_v44 = vadd.f32 %v126_v41, %v121_v43 }
 0x206   :  { %131 = vst.msk [vmem:[%s241_s4] sm:$0xff] %vm21_vm1, %v129_v44 }
 0x209   :  { %v174_v45 = vpop.eup %173 }
 0x20a   :  { %v128_v46 = vmul.f32 0.6931472, %v174_v45 }
 0x20c   :  { %v130_v48 = vadd.f32 %v128_v46, %v122_v47 }
 0x20e   :  { %132 = vst.msk [vmem:[%s241_s4 + $0x8] sm:$0xff] %vm21_vm1, %v130_v48 }

</bundles_post_ra>
